<compile_context>
chip_gen: v6e
topology: v6e:2x2x1
jax: 0.10.0
libtpu: 0.0.40
codegen_flags: <defaults>
</compile_context>

<pallas_src>
import functools

import numpy as np

import jax
import jax.numpy as jnp
from jax import lax
from jax.experimental import pallas as pl
from jax.experimental.pallas import tpu as pltpu


def _round_up(n, m):
    return ((n + m - 1) // m) * m


def _cdiv(a, b):
    return (a + b - 1) // b


def _padded_f32_vmem_bytes(rows, cols):
    """Bytes a (rows, cols) f32 block occupies in VMEM under (8,128) tiling."""
    return _round_up(max(int(rows), 1), 8) * _round_up(max(int(cols), 1), 128) * 4


@functools.lru_cache(maxsize=1)
def _vmem_capacity_bytes():
    """Per-TensorCore VMEM capacity (v5e/v6e: 128 MiB, v7x: 64 MiB per core)."""
    try:
        cap = int(pltpu.get_tpu_info().vmem_capacity_bytes)
        if cap > 0:
            return cap
    except Exception:
        pass
    return 64 * 1024 * 1024   # conservative fallback: v7x per-core VMEM


def sae_kernel(x_ref,
               w1_ref, b1_ref,
               w2_ref, b2_ref,
               w3_ref, b3_ref,
               w4_ref, b4_ref,
               o_ref):
    x = x_ref[...].astype(jnp.float32)

    # fc1: w1 is stored lane-dense as (20, D_pad); contract dim 1 of both
    # operands (x @ w1.T) on the MXU so the big weight only sublane-pads
    # 20->24 rows in VMEM instead of lane-padding to (D_pad, 128).
    h = lax.dot_general(x, w1_ref[...],
                        dimension_numbers=(((1,), (1,)), ((), ())),
                        preferred_element_type=jnp.float32)
    # Kernel is DMA-bound: activation cost is hidden, keep the exact sigmoid.
    h = jax.nn.sigmoid(h + b1_ref[...])
    h = jax.nn.sigmoid(jnp.dot(h, w2_ref[...],
                               preferred_element_type=jnp.float32) + b2_ref[...])
    h = jax.nn.sigmoid(jnp.dot(h, w3_ref[...],
                               preferred_element_type=jnp.float32) + b3_ref[...])
    y = jnp.dot(h, w4_ref[...], preferred_element_type=jnp.float32) + b4_ref[...]
    o_ref[...] = y.astype(o_ref.dtype)


@functools.partial(
    jax.jit, static_argnames=("tile_b", "io_dtype", "single_buffer_weights"))
def sae_forward(x, params, tile_b=None, io_dtype=jnp.float32,
                single_buffer_weights=True):
    """x: (B, nb_documents). params: w1..w4 stored (in, out), biases (1, out)."""
    B, D = x.shape
    D_pad = _round_up(D, 128)                        # lane-dense loads / stores
    io_itemsize = int(np.dtype(io_dtype).itemsize)
    row_align = 8 * max(1, 4 // io_itemsize)         # sublane packing of io dtype

    # ---- per-generation VMEM budget (per TensorCore; v7x runs 2 cores) -----
    phys = _vmem_capacity_bytes()
    vmem_limit = max(min(int(phys * 0.8), 100 * 1024 * 1024), 8 * 1024 * 1024)
    data_budget = max(vmem_limit - 4 * 1024 * 1024, vmem_limit // 2)

    # Resident weight/bias footprint, incl. (8,128) layout padding and the
    # number of pipeline buffers actually allocated for them.
    wt_bufs = 1 if single_buffer_weights else 2
    resident_bytes = wt_bufs * (
        _padded_f32_vmem_bytes(20, D_pad)        # w1 (lane-dense, transposed)
        + _padded_f32_vmem_bytes(20, D_pad)      # w4
        + _padded_f32_vmem_bytes(1, D_pad)       # b4
        + _padded_f32_vmem_bytes(20, 10)         # w2
        + _padded_f32_vmem_bytes(10, 20)         # w3
        + 2 * _padded_f32_vmem_bytes(1, 20)      # b1, b3
        + _padded_f32_vmem_bytes(1, 10))         # b2

    # Streaming bytes per batch row: x + out blocks (double-buffered) plus f32
    # in-kernel temporaries (fc4 result / upcast input).
    bytes_per_row = 2 * 2 * D_pad * io_itemsize + 2 * D_pad * 4

    avail = data_budget - resident_bytes
    tile_b_max = (avail // bytes_per_row) // row_align * row_align
    if tile_b_max < row_align:
        # TODO(synk): for very large nb_documents add a D-tiling grid axis
        # ("arbitrary" reduction over x columns for fc1, "parallel" over output
        # columns for fc4) so blocks fit VMEM even when D_pad is huge.
        raise ValueError(
            f"nb_documents={D} needs D-tiling: resident weights "
            f"({resident_bytes} B) leave no room for a {row_align}-row batch "
            f"tile under the {data_budget} B VMEM budget.")

    B_rows = _round_up(max(B, 1), row_align)
    tile_b_max = min(tile_b_max, B_rows)

    if tile_b is None:
        # >= ~2 MiB blocks amortize the ~0.35 us/step pipeline overhead; use a
        # few grid steps when the batch allows so both v7x TensorCores stream
        # and in/out DMAs overlap across steps.
        min_rows = max(row_align,
                       _round_up(_cdiv(2 * 1024 * 1024, io_itemsize * D_pad),
                                 row_align))
        n_steps = max(_cdiv(B_rows, tile_b_max), min(4, B_rows // min_rows), 1)
        tile_b = min(tile_b_max, _round_up(_cdiv(B_rows, n_steps), row_align))
    else:
        tile_b = max(row_align, (int(tile_b) // row_align) * row_align)
        tile_b = min(tile_b, tile_b_max)
    n_steps = _cdiv(B_rows, tile_b)    # minimize batch-padding waste
    B_pad = n_steps * tile_b

    pb, pd = B_pad - B, D_pad - D
    x_p = jnp.pad(x.astype(io_dtype), ((0, pb), (0, pd)))

    # w1 lane-dense (20, D_pad): zero-padded x columns hit zero-padded w1
    # columns, so the padded math is exact.  Padded output cols are sliced off.
    w1 = jnp.pad(params["w1"].astype(jnp.float32).T, ((0, 0), (0, pd)))
    b1 = params["b1"].astype(jnp.float32)
    w2 = params["w2"].astype(jnp.float32)
    b2 = params["b2"].astype(jnp.float32)
    w3 = params["w3"].astype(jnp.float32)
    b3 = params["b3"].astype(jnp.float32)
    w4 = jnp.pad(params["w4"].astype(jnp.float32), ((0, 0), (0, pd)))
    b4 = jnp.pad(params["b4"].astype(jnp.float32), ((0, 0), (0, pd)))

    def resident(shape):
        # Constant index_map -> fetched once, stays VMEM-resident. Buffered(1)
        # drops the useless second pipeline buffer, halving the footprint of
        # the two D_pad-wide weights and freeing VMEM for bigger batch tiles.
        if single_buffer_weights:
            return pl.BlockSpec(shape, lambda i: (0,) * len(shape),
                                pipeline_mode=pl.Buffered(1))
        return pl.BlockSpec(shape, lambda i: (0,) * len(shape))

    in_specs = [
        pl.BlockSpec((tile_b, D_pad), lambda i: (i, 0)),   # x streams per tile
        resident(w1.shape), resident(b1.shape),
        resident(w2.shape), resident(b2.shape),
        resident(w3.shape), resident(b3.shape),
        resident(w4.shape), resident(b4.shape),
    ]
    out_specs = pl.BlockSpec((tile_b, D_pad), lambda i: (i, 0))

    h1, h2 = 20, 10
    flops = 2 * B_pad * (D_pad * h1 + h1 * h2 + h2 * h1 + h1 * D_pad)
    transcendentals = B_pad * (h1 + h2 + h1)
    weight_bytes = sum(int(a.size) * a.dtype.itemsize
                       for a in (w1, b1, w2, b2, w3, b3, w4, b4))
    bytes_accessed = 2 * B_pad * D_pad * io_itemsize + weight_bytes

    out = pl.pallas_call(
        sae_kernel,
        out_shape=jax.ShapeDtypeStruct((B_pad, D_pad), io_dtype),
        grid=(n_steps,),
        in_specs=in_specs,
        out_specs=out_specs,
        compiler_params=pltpu.CompilerParams(
            dimension_semantics=("parallel",),
            vmem_limit_bytes=int(vmem_limit)),
        cost_estimate=pl.CostEstimate(
            flops=flops,
            transcendentals=transcendentals,
            bytes_accessed=bytes_accessed),
    )(x_p, w1, b1, w2, b2, w3, b3, w4, b4)

    return out[:B, :D]


def init_sae_params(key, nb_documents):
    """torch.nn.Linear-style init (uniform +-1/sqrt(fan_in)); weights stored (in, out)."""
    dims = [(nb_documents, 20), (20, 10), (10, 20), (20, nb_documents)]
    params = {}
    keys = jax.random.split(key, 2 * len(dims))
    for i, (fan_in, fan_out) in enumerate(dims):
        bound = 1.0 / jnp.sqrt(jnp.float32(fan_in))
        params[f"w{i + 1}"] = jax.random.uniform(
            keys[2 * i], (fan_in, fan_out),
            minval=-bound, maxval=bound, dtype=jnp.float32)
        params[f"b{i + 1}"] = jax.random.uniform(
            keys[2 * i + 1], (1, fan_out),
            minval=-bound, maxval=bound, dtype=jnp.float32)
    return params


def sae_reference(x, params):
    """Pure-JAX reference for correctness checking."""
    def sig(z):
        return 1.0 / (1.0 + jnp.exp(-z))
    h = sig(x @ params["w1"] + params["b1"])
    h = sig(h @ params["w2"] + params["b2"])
    h = sig(h @ params["w3"] + params["b3"])
    return h @ params["w4"] + params["b4"]


_SINGLE_BUFFER_OK = True


def _forward(x, params, **kw):
    """Run sae_forward; if single-buffered (Buffered(1)) resident weights are
    not supported by this jax build, fall back to default double-buffering."""
    global _SINGLE_BUFFER_OK
    if _SINGLE_BUFFER_OK:
        try:
            return jax.block_until_ready(
                sae_forward(x, params, single_buffer_weights=True, **kw))
        except Exception:
            _SINGLE_BUFFER_OK = False
    return jax.block_until_ready(
        sae_forward(x, params, single_buffer_weights=False, **kw))


if __name__ == "__main__":
    nb_documents = 32   # small synthetic "number of documents"
    batch = 2

    key = jax.random.PRNGKey(0)
    k_params, k_x = jax.random.split(key)

    params = init_sae_params(k_params, nb_documents)
    x = jax.random.uniform(k_x, (batch, nb_documents), dtype=jnp.float32)

    out = _forward(x, params)
    ref = sae_reference(x, params)
    assert out.shape == (batch, nb_documents)
    assert jnp.allclose(out, ref, atol=1e-5, rtol=1e-5), "mismatch vs reference"

    # Exercise the multi-step batch grid (5 tiles of 8 rows, ragged batch of 37).
    x2 = jax.random.uniform(jax.random.PRNGKey(1), (37, nb_documents),
                            dtype=jnp.float32)
    out2 = _forward(x2, params, tile_b=8)
    ref2 = sae_reference(x2, params)
    assert out2.shape == (37, nb_documents)
    assert jnp.allclose(out2, ref2, atol=1e-5, rtol=1e-5), "mismatch (tiled grid)"

    print("KERNEL_OK")
</pallas_src>

<mosaic_0001>
module attributes {stable_mosaic.version = 11 : i64} {
  func.func @sae_kernel(%arg0: i32, %arg1: memref<8x128xf32, #tpu.memory_space<vmem>>, %arg2: memref<20x128xf32, #tpu.memory_space<vmem>>, %arg3: memref<1x20xf32, #tpu.memory_space<vmem>>, %arg4: memref<20x10xf32, #tpu.memory_space<vmem>>, %arg5: memref<1x10xf32, #tpu.memory_space<vmem>>, %arg6: memref<10x20xf32, #tpu.memory_space<vmem>>, %arg7: memref<1x20xf32, #tpu.memory_space<vmem>>, %arg8: memref<20x128xf32, #tpu.memory_space<vmem>>, %arg9: memref<1x128xf32, #tpu.memory_space<vmem>>, %arg10: memref<8x128xf32, #tpu.memory_space<vmem>>) attributes {dimension_semantics = [#tpu.dimension_semantics<parallel>], iteration_bounds = array<i64: 1>, scalar_prefetch = 0 : i64, scratch_operands = 0 : i64, tpu.core_type = #tpu.core_type<tc>, window_params = [{transform_indices = @transform_0, window_bounds = array<i64: 8, 128>}, {pipeline_mode = #tpu.pipeline_mode<synchronous>, transform_indices = @transform_1, window_bounds = array<i64: 20, 128>}, {pipeline_mode = #tpu.pipeline_mode<synchronous>, transform_indices = @transform_2, window_bounds = array<i64: 1, 20>}, {pipeline_mode = #tpu.pipeline_mode<synchronous>, transform_indices = @transform_3, window_bounds = array<i64: 20, 10>}, {pipeline_mode = #tpu.pipeline_mode<synchronous>, transform_indices = @transform_4, window_bounds = array<i64: 1, 10>}, {pipeline_mode = #tpu.pipeline_mode<synchronous>, transform_indices = @transform_5, window_bounds = array<i64: 10, 20>}, {pipeline_mode = #tpu.pipeline_mode<synchronous>, transform_indices = @transform_6, window_bounds = array<i64: 1, 20>}, {pipeline_mode = #tpu.pipeline_mode<synchronous>, transform_indices = @transform_7, window_bounds = array<i64: 20, 128>}, {pipeline_mode = #tpu.pipeline_mode<synchronous>, transform_indices = @transform_8, window_bounds = array<i64: 1, 128>}, {transform_indices = @transform_9, window_bounds = array<i64: 8, 128>}]} {
    %c0 = arith.constant 0 : index
    %c0_0 = arith.constant 0 : index
    %0 = vector.load %arg1[%c0, %c0_0] : memref<8x128xf32, #tpu.memory_space<vmem>>, vector<8x128xf32>
    %c0_1 = arith.constant 0 : index
    %c0_2 = arith.constant 0 : index
    %1 = vector.load %arg2[%c0_1, %c0_2] : memref<20x128xf32, #tpu.memory_space<vmem>>, vector<20x128xf32>
    %cst = arith.constant dense<0.000000e+00> : vector<8x20xf32>
    %2 = tpu.matmul %0, %1, %cst {dimension_numbers = #tpu.dot_dimension_numbers<[1], [1], [0], [0], [0, 0, 1, 0], [], []>} : vector<8x128xf32>, vector<20x128xf32>, vector<8x20xf32> -> vector<8x20xf32>
    %c0_3 = arith.constant 0 : index
    %c0_4 = arith.constant 0 : index
    %3 = vector.load %arg3[%c0_3, %c0_4] : memref<1x20xf32, #tpu.memory_space<vmem>>, vector<1x20xf32>
    %4 = vector.broadcast %3 : vector<1x20xf32> to vector<8x20xf32>
    %5 = arith.addf %2, %4 : vector<8x20xf32>
    %6 = arith.negf %5 : vector<8x20xf32>
    %7 = math.exp %6 : vector<8x20xf32>
    %cst_5 = arith.constant 1.000000e+00 : f32
    %8 = vector.broadcast %cst_5 : f32 to vector<8x20xf32>
    %9 = arith.addf %8, %7 : vector<8x20xf32>
    %10 = arith.divf %8, %9 : vector<8x20xf32>
    %c0_6 = arith.constant 0 : index
    %c0_7 = arith.constant 0 : index
    %11 = vector.load %arg4[%c0_6, %c0_7] : memref<20x10xf32, #tpu.memory_space<vmem>>, vector<20x10xf32>
    %cst_8 = arith.constant dense<0.000000e+00> : vector<8x10xf32>
    %12 = tpu.matmul %10, %11, %cst_8 {dimension_numbers = #tpu.dot_dimension_numbers<[1], [0], [0], [1], [0, 0, 1, 1], [], []>} : vector<8x20xf32>, vector<20x10xf32>, vector<8x10xf32> -> vector<8x10xf32>
    %c0_9 = arith.constant 0 : index
    %c0_10 = arith.constant 0 : index
    %13 = vector.load %arg5[%c0_9, %c0_10] : memref<1x10xf32, #tpu.memory_space<vmem>>, vector<1x10xf32>
    %14 = vector.broadcast %13 : vector<1x10xf32> to vector<8x10xf32>
    %15 = arith.addf %12, %14 : vector<8x10xf32>
    %16 = arith.negf %15 : vector<8x10xf32>
    %17 = math.exp %16 : vector<8x10xf32>
    %cst_11 = arith.constant 1.000000e+00 : f32
    %18 = vector.broadcast %cst_11 : f32 to vector<8x10xf32>
    %19 = arith.addf %18, %17 : vector<8x10xf32>
    %20 = arith.divf %18, %19 : vector<8x10xf32>
    %c0_12 = arith.constant 0 : index
    %c0_13 = arith.constant 0 : index
    %21 = vector.load %arg6[%c0_12, %c0_13] : memref<10x20xf32, #tpu.memory_space<vmem>>, vector<10x20xf32>
    %cst_14 = arith.constant dense<0.000000e+00> : vector<8x20xf32>
    %22 = tpu.matmul %20, %21, %cst_14 {dimension_numbers = #tpu.dot_dimension_numbers<[1], [0], [0], [1], [0, 0, 1, 1], [], []>} : vector<8x10xf32>, vector<10x20xf32>, vector<8x20xf32> -> vector<8x20xf32>
    %c0_15 = arith.constant 0 : index
    %c0_16 = arith.constant 0 : index
    %23 = vector.load %arg7[%c0_15, %c0_16] : memref<1x20xf32, #tpu.memory_space<vmem>>, vector<1x20xf32>
    %24 = vector.broadcast %23 : vector<1x20xf32> to vector<8x20xf32>
    %25 = arith.addf %22, %24 : vector<8x20xf32>
    %26 = arith.negf %25 : vector<8x20xf32>
    %27 = math.exp %26 : vector<8x20xf32>
    %cst_17 = arith.constant 1.000000e+00 : f32
    %28 = vector.broadcast %cst_17 : f32 to vector<8x20xf32>
    %29 = arith.addf %28, %27 : vector<8x20xf32>
    %30 = arith.divf %28, %29 : vector<8x20xf32>
    %c0_18 = arith.constant 0 : index
    %c0_19 = arith.constant 0 : index
    %31 = vector.load %arg8[%c0_18, %c0_19] : memref<20x128xf32, #tpu.memory_space<vmem>>, vector<20x128xf32>
    %cst_20 = arith.constant dense<0.000000e+00> : vector<8x128xf32>
    %32 = tpu.matmul %30, %31, %cst_20 {dimension_numbers = #tpu.dot_dimension_numbers<[1], [0], [0], [1], [0, 0, 1, 1], [], []>} : vector<8x20xf32>, vector<20x128xf32>, vector<8x128xf32> -> vector<8x128xf32>
    %c0_21 = arith.constant 0 : index
    %c0_22 = arith.constant 0 : index
    %33 = vector.load %arg9[%c0_21, %c0_22] : memref<1x128xf32, #tpu.memory_space<vmem>>, vector<1x128xf32>
    %34 = vector.broadcast %33 : vector<1x128xf32> to vector<8x128xf32>
    %35 = arith.addf %32, %34 : vector<8x128xf32>
    %c0_23 = arith.constant 0 : index
    %c0_24 = arith.constant 0 : index
    %36 = vector.load %arg10[%c0_23, %c0_24] : memref<8x128xf32, #tpu.memory_space<vmem>>, vector<8x128xf32>
    tpu.vector_store %arg10[%c0_23, %c0_24], %35 {strides = array<i32>} : memref<8x128xf32, #tpu.memory_space<vmem>>, vector<8x128xf32>,
    return
  }
  func.func @transform_0(%arg0: i32) -> (i32, i32) {
    %c0_i32 = arith.constant 0 : i32
    %c0_i32_0 = arith.constant 0 : i32
    return %arg0, %c0_i32 : i32, i32
  }
  func.func @transform_1(%arg0: i32) -> (i32, i32) {
    %c0_i32 = arith.constant 0 : i32
    %c0_i32_0 = arith.constant 0 : i32
    %c0_i32_1 = arith.constant 0 : i32
    return %c0_i32, %c0_i32_0 : i32, i32
  }
  func.func @transform_2(%arg0: i32) -> (i32, i32) {
    %c0_i32 = arith.constant 0 : i32
    %c0_i32_0 = arith.constant 0 : i32
    %c0_i32_1 = arith.constant 0 : i32
    return %c0_i32, %c0_i32_0 : i32, i32
  }
  func.func @transform_3(%arg0: i32) -> (i32, i32) {
    %c0_i32 = arith.constant 0 : i32
    %c0_i32_0 = arith.constant 0 : i32
    %c0_i32_1 = arith.constant 0 : i32
    return %c0_i32, %c0_i32_0 : i32, i32
  }
  func.func @transform_4(%arg0: i32) -> (i32, i32) {
    %c0_i32 = arith.constant 0 : i32
    %c0_i32_0 = arith.constant 0 : i32
    %c0_i32_1 = arith.constant 0 : i32
    return %c0_i32, %c0_i32_0 : i32, i32
  }
  func.func @transform_5(%arg0: i32) -> (i32, i32) {
    %c0_i32 = arith.constant 0 : i32
    %c0_i32_0 = arith.constant 0 : i32
    %c0_i32_1 = arith.constant 0 : i32
    return %c0_i32, %c0_i32_0 : i32, i32
  }
  func.func @transform_6(%arg0: i32) -> (i32, i32) {
    %c0_i32 = arith.constant 0 : i32
    %c0_i32_0 = arith.constant 0 : i32
    %c0_i32_1 = arith.constant 0 : i32
    return %c0_i32, %c0_i32_0 : i32, i32
  }
  func.func @transform_7(%arg0: i32) -> (i32, i32) {
    %c0_i32 = arith.constant 0 : i32
    %c0_i32_0 = arith.constant 0 : i32
    %c0_i32_1 = arith.constant 0 : i32
    return %c0_i32, %c0_i32_0 : i32, i32
  }
  func.func @transform_8(%arg0: i32) -> (i32, i32) {
    %c0_i32 = arith.constant 0 : i32
    %c0_i32_0 = arith.constant 0 : i32
    %c0_i32_1 = arith.constant 0 : i32
    return %c0_i32, %c0_i32_0 : i32, i32
  }
  func.func @transform_9(%arg0: i32) -> (i32, i32) {
    %c0_i32 = arith.constant 0 : i32
    %c0_i32_0 = arith.constant 0 : i32
    return %arg0, %c0_i32 : i32, i32
  }
}

module attributes {stable_mosaic.version = 11 : i64} {
  func.func @sae_kernel(%arg0: i32, %arg1: memref<8x128xf32, #tpu.memory_space<vmem>>, %arg2: memref<20x128xf32, #tpu.memory_space<vmem>>, %arg3: memref<1x20xf32, #tpu.memory_space<vmem>>, %arg4: memref<20x10xf32, #tpu.memory_space<vmem>>, %arg5: memref<1x10xf32, #tpu.memory_space<vmem>>, %arg6: memref<10x20xf32, #tpu.memory_space<vmem>>, %arg7: memref<1x20xf32, #tpu.memory_space<vmem>>, %arg8: memref<20x128xf32, #tpu.memory_space<vmem>>, %arg9: memref<1x128xf32, #tpu.memory_space<vmem>>, %arg10: memref<8x128xf32, #tpu.memory_space<vmem>>) attributes {dimension_semantics = [#tpu.dimension_semantics<parallel>], iteration_bounds = array<i64: 1>, scalar_prefetch = 0 : i64, scratch_operands = 0 : i64, tpu.core_type = #tpu.core_type<tc>, window_params = [{transform_indices = @transform_0, window_bounds = array<i64: 8, 128>}, {pipeline_mode = #tpu.pipeline_mode<synchronous>, transform_indices = @transform_1, window_bounds = array<i64: 20, 128>}, {pipeline_mode = #tpu.pipeline_mode<synchronous>, transform_indices = @transform_2, window_bounds = array<i64: 1, 20>}, {pipeline_mode = #tpu.pipeline_mode<synchronous>, transform_indices = @transform_3, window_bounds = array<i64: 20, 10>}, {pipeline_mode = #tpu.pipeline_mode<synchronous>, transform_indices = @transform_4, window_bounds = array<i64: 1, 10>}, {pipeline_mode = #tpu.pipeline_mode<synchronous>, transform_indices = @transform_5, window_bounds = array<i64: 10, 20>}, {pipeline_mode = #tpu.pipeline_mode<synchronous>, transform_indices = @transform_6, window_bounds = array<i64: 1, 20>}, {pipeline_mode = #tpu.pipeline_mode<synchronous>, transform_indices = @transform_7, window_bounds = array<i64: 20, 128>}, {pipeline_mode = #tpu.pipeline_mode<synchronous>, transform_indices = @transform_8, window_bounds = array<i64: 1, 128>}, {transform_indices = @transform_9, window_bounds = array<i64: 8, 128>}]} {
    %c0 = arith.constant 0 : index
    %c0_0 = arith.constant 0 : index
    %0 = vector.load %arg1[%c0, %c0_0] : memref<8x128xf32, #tpu.memory_space<vmem>>, vector<8x128xf32>
    %c0_1 = arith.constant 0 : index
    %c0_2 = arith.constant 0 : index
    %1 = vector.load %arg2[%c0_1, %c0_2] : memref<20x128xf32, #tpu.memory_space<vmem>>, vector<20x128xf32>
    %cst = arith.constant dense<0.000000e+00> : vector<8x20xf32>
    %2 = tpu.matmul %0, %1, %cst {dimension_numbers = #tpu.dot_dimension_numbers<[1], [1], [0], [0], [0, 0, 1, 0], [], []>} : vector<8x128xf32>, vector<20x128xf32>, vector<8x20xf32> -> vector<8x20xf32>
    %c0_3 = arith.constant 0 : index
    %c0_4 = arith.constant 0 : index
    %3 = vector.load %arg3[%c0_3, %c0_4] : memref<1x20xf32, #tpu.memory_space<vmem>>, vector<1x20xf32>
    %4 = vector.broadcast %3 : vector<1x20xf32> to vector<8x20xf32>
    %5 = arith.addf %2, %4 : vector<8x20xf32>
    %6 = arith.negf %5 : vector<8x20xf32>
    %7 = math.exp %6 : vector<8x20xf32>
    %cst_5 = arith.constant 1.000000e+00 : f32
    %8 = vector.broadcast %cst_5 : f32 to vector<8x20xf32>
    %9 = arith.addf %8, %7 : vector<8x20xf32>
    %10 = arith.divf %8, %9 : vector<8x20xf32>
    %c0_6 = arith.constant 0 : index
    %c0_7 = arith.constant 0 : index
    %11 = vector.load %arg4[%c0_6, %c0_7] : memref<20x10xf32, #tpu.memory_space<vmem>>, vector<20x10xf32>
    %cst_8 = arith.constant dense<0.000000e+00> : vector<8x10xf32>
    %12 = tpu.matmul %10, %11, %cst_8 {dimension_numbers = #tpu.dot_dimension_numbers<[1], [0], [0], [1], [0, 0, 1, 1], [], []>} : vector<8x20xf32>, vector<20x10xf32>, vector<8x10xf32> -> vector<8x10xf32>
    %c0_9 = arith.constant 0 : index
    %c0_10 = arith.constant 0 : index
    %13 = vector.load %arg5[%c0_9, %c0_10] : memref<1x10xf32, #tpu.memory_space<vmem>>, vector<1x10xf32>
    %14 = vector.broadcast %13 : vector<1x10xf32> to vector<8x10xf32>
    %15 = arith.addf %12, %14 : vector<8x10xf32>
    %16 = arith.negf %15 : vector<8x10xf32>
    %17 = math.exp %16 : vector<8x10xf32>
    %cst_11 = arith.constant 1.000000e+00 : f32
    %18 = vector.broadcast %cst_11 : f32 to vector<8x10xf32>
    %19 = arith.addf %18, %17 : vector<8x10xf32>
    %20 = arith.divf %18, %19 : vector<8x10xf32>
    %c0_12 = arith.constant 0 : index
    %c0_13 = arith.constant 0 : index
    %21 = vector.load %arg6[%c0_12, %c0_13] : memref<10x20xf32, #tpu.memory_space<vmem>>, vector<10x20xf32>
    %cst_14 = arith.constant dense<0.000000e+00> : vector<8x20xf32>
    %22 = tpu.matmul %20, %21, %cst_14 {dimension_numbers = #tpu.dot_dimension_numbers<[1], [0], [0], [1], [0, 0, 1, 1], [], []>} : vector<8x10xf32>, vector<10x20xf32>, vector<8x20xf32> -> vector<8x20xf32>
    %c0_15 = arith.constant 0 : index
    %c0_16 = arith.constant 0 : index
    %23 = vector.load %arg7[%c0_15, %c0_16] : memref<1x20xf32, #tpu.memory_space<vmem>>, vector<1x20xf32>
    %24 = vector.broadcast %23 : vector<1x20xf32> to vector<8x20xf32>
    %25 = arith.addf %22, %24 : vector<8x20xf32>
    %26 = arith.negf %25 : vector<8x20xf32>
    %27 = math.exp %26 : vector<8x20xf32>
    %cst_17 = arith.constant 1.000000e+00 : f32
    %28 = vector.broadcast %cst_17 : f32 to vector<8x20xf32>
    %29 = arith.addf %28, %27 : vector<8x20xf32>
    %30 = arith.divf %28, %29 : vector<8x20xf32>
    %c0_18 = arith.constant 0 : index
    %c0_19 = arith.constant 0 : index
    %31 = vector.load %arg8[%c0_18, %c0_19] : memref<20x128xf32, #tpu.memory_space<vmem>>, vector<20x128xf32>
    %cst_20 = arith.constant dense<0.000000e+00> : vector<8x128xf32>
    %32 = tpu.matmul %30, %31, %cst_20 {dimension_numbers = #tpu.dot_dimension_numbers<[1], [0], [0], [1], [0, 0, 1, 1], [], []>} : vector<8x20xf32>, vector<20x128xf32>, vector<8x128xf32> -> vector<8x128xf32>
    %c0_21 = arith.constant 0 : index
    %c0_22 = arith.constant 0 : index
    %33 = vector.load %arg9[%c0_21, %c0_22] : memref<1x128xf32, #tpu.memory_space<vmem>>, vector<1x128xf32>
    %34 = vector.broadcast %33 : vector<1x128xf32> to vector<8x128xf32>
    %35 = arith.addf %32, %34 : vector<8x128xf32>
    %c0_23 = arith.constant 0 : index
    %c0_24 = arith.constant 0 : index
    %36 = vector.load %arg10[%c0_23, %c0_24] : memref<8x128xf32, #tpu.memory_space<vmem>>, vector<8x128xf32>
    tpu.vector_store %arg10[%c0_23, %c0_24], %35 {strides = array<i32>} : memref<8x128xf32, #tpu.memory_space<vmem>>, vector<8x128xf32>,
    return
  }
  func.func @transform_0(%arg0: i32) -> (i32, i32) {
    %c0_i32 = arith.constant 0 : i32
    %c0_i32_0 = arith.constant 0 : i32
    return %arg0, %c0_i32 : i32, i32
  }
  func.func @transform_1(%arg0: i32) -> (i32, i32) {
    %c0_i32 = arith.constant 0 : i32
    %c0_i32_0 = arith.constant 0 : i32
    %c0_i32_1 = arith.constant 0 : i32
    return %c0_i32, %c0_i32_0 : i32, i32
  }
  func.func @transform_2(%arg0: i32) -> (i32, i32) {
    %c0_i32 = arith.constant 0 : i32
    %c0_i32_0 = arith.constant 0 : i32
    %c0_i32_1 = arith.constant 0 : i32
    return %c0_i32, %c0_i32_0 : i32, i32
  }
  func.func @transform_3(%arg0: i32) -> (i32, i32) {
    %c0_i32 = arith.constant 0 : i32
    %c0_i32_0 = arith.constant 0 : i32
    %c0_i32_1 = arith.constant 0 : i32
    return %c0_i32, %c0_i32_0 : i32, i32
  }
  func.func @transform_4(%arg0: i32) -> (i32, i32) {
    %c0_i32 = arith.constant 0 : i32
    %c0_i32_0 = arith.constant 0 : i32
    %c0_i32_1 = arith.constant 0 : i32
    return %c0_i32, %c0_i32_0 : i32, i32
  }
  func.func @transform_5(%arg0: i32) -> (i32, i32) {
    %c0_i32 = arith.constant 0 : i32
    %c0_i32_0 = arith.constant 0 : i32
    %c0_i32_1 = arith.constant 0 : i32
    return %c0_i32, %c0_i32_0 : i32, i32
  }
  func.func @transform_6(%arg0: i32) -> (i32, i32) {
    %c0_i32 = arith.constant 0 : i32
    %c0_i32_0 = arith.constant 0 : i32
    %c0_i32_1 = arith.constant 0 : i32
    return %c0_i32, %c0_i32_0 : i32, i32
  }
  func.func @transform_7(%arg0: i32) -> (i32, i32) {
    %c0_i32 = arith.constant 0 : i32
    %c0_i32_0 = arith.constant 0 : i32
    %c0_i32_1 = arith.constant 0 : i32
    return %c0_i32, %c0_i32_0 : i32, i32
  }
  func.func @transform_8(%arg0: i32) -> (i32, i32) {
    %c0_i32 = arith.constant 0 : i32
    %c0_i32_0 = arith.constant 0 : i32
    %c0_i32_1 = arith.constant 0 : i32
    return %c0_i32, %c0_i32_0 : i32, i32
  }
  func.func @transform_9(%arg0: i32) -> (i32, i32) {
    %c0_i32 = arith.constant 0 : i32
    %c0_i32_0 = arith.constant 0 : i32
    return %arg0, %c0_i32 : i32, i32
  }
}

</mosaic_0001>

<bundles_post_ra>
// kernel: sae_forward.1
= control target key start
LH: loop header
LB: loop body
LE: loop exit
PB: predicated region body
PF: predicated region fallthrough
CT: control target
= control target key end

     0   :  { %v473_v0 = vmov 0.0   ;;  %vm474_vm0 = vmmov 0   ;;  %vm133_vm1 = vcmask 1043456   ;;  %vm129_vm2 = vcmask 162816   ;;  %s599_s1 = inlined_call_operand.vmem [shape: f32[20,128], index: 1, kind: input, shape index: {}]   ;;  %s600_s0 = inlined_call_operand.vmem [shape: f32[8,128], index: 0, kind: input, shape index: {}]   ;;  %s601_s3 = inlined_call_operand.vmem [shape: f32[20,10], index: 3, kind: input, shape index: {}]   ;;  %s602_s2 = inlined_call_operand.vmem [shape: f32[1,20], index: 2, kind: input, shape index: {}]   ;;  %s603_s5 = inlined_call_operand.vmem [shape: f32[10,20], index: 5, kind: input, shape index: {}]   ;;  %s604_s4 = inlined_call_operand.vmem [shape: f32[1,10], index: 4, kind: input, shape index: {}]   ;;  %s605_s7 = inlined_call_operand.vmem [shape: f32[20,128], index: 7, kind: input, shape index: {}]   ;;  %s606_s6 = inlined_call_operand.vmem [shape: f32[1,20], index: 6, kind: input, shape index: {}]   ;;  %s607_s8 = inlined_call_operand.vmem [shape: f32[1,128], index: 8, kind: input, shape index: {}]   ;;  %s608_s9 = inlined_call_operand.vmem [shape: f32[8,128], index: 9, kind: output, shape index: {}]  }
   0x1   :  { %425 = vmatprep.subr.mxu0 %v473_v0  ;;  %v35_v1 = vld [vmem:[%s599_s1 + $0x10] sm:$0xf]  ;;  %431 = vmatprep.mubr.msk.f32.mxu0 %vm474_vm0, %v473_v0  ;;  %v34_v2 = vld [vmem:[%s599_s1 + $0x8] sm:$0xff]  ;;  %v33_v3 = vld [vmem:[%s599_s1] sm:$0xff]  ;;  %vm226_vm3 = vcmask 1041408   ;;  %vm222_vm4 = vcmask 80896  }
   0x2   :  { %426 = vmatpush3.xpose.msra.mxu0 %v35_v1  ;;  %434 = vmatprep.subr.mxu1 %v473_v0  ;;  %v32_v4 = vld [vmem:[%s600_s0] sm:$0xff]  ;;  %v121_v5 = vld [vmem:[%s601_s3 + $0x10] sm:$0xf]  ;;  %v120_v6 = vld [vmem:[%s601_s3 + $0x8] sm:$0xff] }
   0x3   :  { %427 = vmatprep.subr.mxu0 %v473_v0  ;;  %440 = vmatprep.mubr.msk.f32.mxu1 %vm474_vm0, %v473_v0  ;;  %v119_v7 = vld [vmem:[%s601_s3] sm:$0xff]  ;;  %v214_v16 = vld [vmem:[%s603_s5 + $0x8] sm:$0x3]  ;;  %v308_v26 = vld [vmem:[%s605_s7 + $0x10] sm:$0xf] }
   0x4   :  { %435 = vmatpush3.msk.msra.mxu1 %vm133_vm1, %v121_v5  ;;  %v397_v8 = vld [vmem:[%s602_s2] ss:$0 sm:$0xff]  ;;  %v307_v27 = vld [vmem:[%s605_s7 + $0x8] sm:$0xff] }
   0x5   :  { %436 = vmatprep.subr.mxu1 %v473_v0  ;;  %v213_v17 = vld [vmem:[%s603_s5] sm:$0xff] }
   0x6   :  { %428 = vmatpush3.xpose.msra.mxu0 %v34_v2  ;;  %437 = vmatpush3.msra.mxu1 %v120_v6  ;;  %v399_v18 = vld [vmem:[%s604_s4] ss:$0 sm:$0xff] }
   0x7   :  { %429 = vmatprep.subr.mxu0 %v473_v0  ;;  %438 = vmatprep.subr.mxu1 %v473_v0  ;;  %v306_v28 = vld [vmem:[%s605_s7] sm:$0xff] }
   0x8   :  { %439 = vmatpush3.msra.mxu1 %v119_v7  ;;  %v403_v29 = vld [vmem:[%s606_s6] ss:$0 sm:$0xff] }
   0x9   :  { %443 = vmatprep.subr.mxu1 %v473_v0  ;;  %v407_v37 = vld [vmem:[%s607_s8] ss:$0 sm:$0xff] }
   0xa   :  { %430 = vmatpush3.xpose.msra.mxu0 %v33_v3 }
   0xd   :  { %432 = vmatmul.mubr.f32.vlgmr.msra.gmra.mxu0 %v32_v4 }
  0xcd   :  { %v109_v9 = vpop.f32.mrf.mxu0 }
  0xce   :  { %v110_v10 = vadd.f32 %v397_v8, %v109_v9 }
  0xcf   :  { %v433_v11 = vpop.f32.mrf.mxu0 }
  0xd0   :  { %v398_v12 = vmul.f32 -1.442695, %v110_v10 }
  0xd2   :  { %461 = vpow2.f32 %v398_v12 }
  0xdf   :  { %v462_v13 = vpop.eup %461 }
  0xe0   :  { %v116_v14 = vadd.f32 1.0, %v462_v13 }
  0xe2   :  { %463 = vrcp.f32 %v116_v14 }
  0xef   :  { %v464_v15 = vpop.eup %463 }
  0xf0   :  { %441 = vmatmul.mubr.msk.f32.vlgmr.msra.gmra.mxu1 %vm129_vm2, %v464_v15 }
  0xf1   :  { %447 = vmatprep.mubr.msk.f32.mxu1 %vm474_vm0, %v473_v0  ;;  %444 = vmatpush3.msk.msra.mxu1 %vm226_vm3, %v214_v16 }
  0xf2   :  { %445 = vmatprep.subr.mxu1 %v473_v0 }
  0xf3   :  { %446 = vmatpush3.msra.mxu1 %v213_v17 }
  0xf4   :  { %450 = vmatprep.subr.mxu1 %v473_v0 }
 0x1b0   :  { %v203_v19 = vpop.f32.mrf.mxu1 }
 0x1b1   :  { %v204_v20 = vadd.f32 %v399_v18, %v203_v19 }
 0x1b2   :  { %v442_v21 = vpop.f32.mrf.mxu1 }
 0x1b3   :  { %v402_v22 = vmul.f32 -1.442695, %v204_v20 }
 0x1b5   :  { %465 = vpow2.f32 %v402_v22 }
 0x1c2   :  { %v466_v23 = vpop.eup %465 }
 0x1c3   :  { %v210_v24 = vadd.f32 1.0, %v466_v23 }
 0x1c5   :  { %467 = vrcp.f32 %v210_v24 }
 0x1d2   :  { %v468_v25 = vpop.eup %467 }
 0x1d3   :  { %448 = vmatmul.mubr.msk.f32.vlgmr.msra.gmra.mxu1 %vm222_vm4, %v468_v25 }
 0x1d4   :  { %456 = vmatprep.mubr.msk.f32.mxu1 %vm474_vm0, %v473_v0  ;;  %451 = vmatpush3.msk.msra.mxu1 %vm133_vm1, %v308_v26 }
 0x1d5   :  { %452 = vmatprep.subr.mxu1 %v473_v0 }
 0x1d6   :  { %453 = vmatpush3.msra.mxu1 %v307_v27 }
 0x1d7   :  { %454 = vmatprep.subr.mxu1 %v473_v0 }
 0x1d8   :  { %455 = vmatpush3.msra.mxu1 %v306_v28 }
 0x293   :  { %v296_v30 = vpop.f32.mrf.mxu1 }
 0x294   :  { %v297_v31 = vadd.f32 %v403_v29, %v296_v30 }
 0x295   :  { %v449_v32 = vpop.f32.mrf.mxu1 }
 0x296   :  { %v406_v33 = vmul.f32 -1.442695, %v297_v31 }
 0x298   :  { %469 = vpow2.f32 %v406_v33 }
 0x2a5   :  { %v470_v34 = vpop.eup %469 }
 0x2a6   :  { %v303_v35 = vadd.f32 1.0, %v470_v34 }
 0x2a8   :  { %471 = vrcp.f32 %v303_v35 }
 0x2b5   :  { %v472_v36 = vpop.eup %471 }
 0x2b6   :  { %457 = vmatmul.mubr.msk.f32.vlgmr.msra.gmra.mxu1 %vm129_vm2, %v472_v36 }
 0x376   :  { %v388_v38 = vpop.f32.mrf.mxu1 }
 0x377   :  { %v389_v39 = vadd.f32 %v407_v37, %v388_v38 }
 0x378   :  { %v458_v40 = vpop.f32.mrf.mxu1 }
 0x379   :  { %392 = vst [vmem:[%s608_s9] sm:$0xff] %v389_v39 }

// kernel: sae_forward.1
= control target key start
LH: loop header
LB: loop body
LE: loop exit
PB: predicated region body
PF: predicated region fallthrough
CT: control target
= control target key end

     0   :  { %v473_v0 = vmov 0.0   ;;  %vm474_vm0 = vmmov 0   ;;  %vm133_vm1 = vcmask 1043456   ;;  %vm129_vm2 = vcmask 162816   ;;  %s599_s1 = inlined_call_operand.vmem [shape: f32[20,128], index: 1, kind: input, shape index: {}]   ;;  %s600_s0 = inlined_call_operand.vmem [shape: f32[8,128], index: 0, kind: input, shape index: {}]   ;;  %s601_s3 = inlined_call_operand.vmem [shape: f32[20,10], index: 3, kind: input, shape index: {}]   ;;  %s602_s2 = inlined_call_operand.vmem [shape: f32[1,20], index: 2, kind: input, shape index: {}]   ;;  %s603_s5 = inlined_call_operand.vmem [shape: f32[10,20], index: 5, kind: input, shape index: {}]   ;;  %s604_s4 = inlined_call_operand.vmem [shape: f32[1,10], index: 4, kind: input, shape index: {}]   ;;  %s605_s7 = inlined_call_operand.vmem [shape: f32[20,128], index: 7, kind: input, shape index: {}]   ;;  %s606_s6 = inlined_call_operand.vmem [shape: f32[1,20], index: 6, kind: input, shape index: {}]   ;;  %s607_s8 = inlined_call_operand.vmem [shape: f32[1,128], index: 8, kind: input, shape index: {}]   ;;  %s608_s9 = inlined_call_operand.vmem [shape: f32[8,128], index: 9, kind: output, shape index: {}]  }
   0x1   :  { %425 = vmatprep.subr.mxu0 %v473_v0  ;;  %v35_v1 = vld [vmem:[%s599_s1 + $0x10] sm:$0xf]  ;;  %431 = vmatprep.mubr.msk.f32.mxu0 %vm474_vm0, %v473_v0  ;;  %v34_v2 = vld [vmem:[%s599_s1 + $0x8] sm:$0xff]  ;;  %v33_v3 = vld [vmem:[%s599_s1] sm:$0xff]  ;;  %vm226_vm3 = vcmask 1041408   ;;  %vm222_vm4 = vcmask 80896  }
   0x2   :  { %426 = vmatpush3.xpose.msra.mxu0 %v35_v1  ;;  %434 = vmatprep.subr.mxu1 %v473_v0  ;;  %v32_v4 = vld [vmem:[%s600_s0] sm:$0xff]  ;;  %v121_v5 = vld [vmem:[%s601_s3 + $0x10] sm:$0xf]  ;;  %v120_v6 = vld [vmem:[%s601_s3 + $0x8] sm:$0xff] }
   0x3   :  { %427 = vmatprep.subr.mxu0 %v473_v0  ;;  %440 = vmatprep.mubr.msk.f32.mxu1 %vm474_vm0, %v473_v0  ;;  %v119_v7 = vld [vmem:[%s601_s3] sm:$0xff]  ;;  %v214_v16 = vld [vmem:[%s603_s5 + $0x8] sm:$0x3]  ;;  %v308_v26 = vld [vmem:[%s605_s7 + $0x10] sm:$0xf] }
   0x4   :  { %435 = vmatpush3.msk.msra.mxu1 %vm133_vm1, %v121_v5  ;;  %v397_v8 = vld [vmem:[%s602_s2] ss:$0 sm:$0xff]  ;;  %v307_v27 = vld [vmem:[%s605_s7 + $0x8] sm:$0xff] }
   0x5   :  { %436 = vmatprep.subr.mxu1 %v473_v0  ;;  %v213_v17 = vld [vmem:[%s603_s5] sm:$0xff] }
   0x6   :  { %428 = vmatpush3.xpose.msra.mxu0 %v34_v2  ;;  %437 = vmatpush3.msra.mxu1 %v120_v6  ;;  %v399_v18 = vld [vmem:[%s604_s4] ss:$0 sm:$0xff] }
   0x7   :  { %429 = vmatprep.subr.mxu0 %v473_v0  ;;  %438 = vmatprep.subr.mxu1 %v473_v0  ;;  %v306_v28 = vld [vmem:[%s605_s7] sm:$0xff] }
   0x8   :  { %439 = vmatpush3.msra.mxu1 %v119_v7  ;;  %v403_v29 = vld [vmem:[%s606_s6] ss:$0 sm:$0xff] }
   0x9   :  { %443 = vmatprep.subr.mxu1 %v473_v0  ;;  %v407_v37 = vld [vmem:[%s607_s8] ss:$0 sm:$0xff] }
   0xa   :  { %430 = vmatpush3.xpose.msra.mxu0 %v33_v3 }
   0xd   :  { %432 = vmatmul.mubr.f32.vlgmr.msra.gmra.mxu0 %v32_v4 }
  0xcd   :  { %v109_v9 = vpop.f32.mrf.mxu0 }
  0xce   :  { %v110_v10 = vadd.f32 %v397_v8, %v109_v9 }
  0xcf   :  { %v433_v11 = vpop.f32.mrf.mxu0 }
  0xd0   :  { %v398_v12 = vmul.f32 -1.442695, %v110_v10 }
  0xd2   :  { %461 = vpow2.f32 %v398_v12 }
  0xdf   :  { %v462_v13 = vpop.eup %461 }
  0xe0   :  { %v116_v14 = vadd.f32 1.0, %v462_v13 }
  0xe2   :  { %463 = vrcp.f32 %v116_v14 }
  0xef   :  { %v464_v15 = vpop.eup %463 }
  0xf0   :  { %441 = vmatmul.mubr.msk.f32.vlgmr.msra.gmra.mxu1 %vm129_vm2, %v464_v15 }
  0xf1   :  { %447 = vmatprep.mubr.msk.f32.mxu1 %vm474_vm0, %v473_v0  ;;  %444 = vmatpush3.msk.msra.mxu1 %vm226_vm3, %v214_v16 }
  0xf2   :  { %445 = vmatprep.subr.mxu1 %v473_v0 }
  0xf3   :  { %446 = vmatpush3.msra.mxu1 %v213_v17 }
  0xf4   :  { %450 = vmatprep.subr.mxu1 %v473_v0 }
 0x1b0   :  { %v203_v19 = vpop.f32.mrf.mxu1 }
 0x1b1   :  { %v204_v20 = vadd.f32 %v399_v18, %v203_v19 }
 0x1b2   :  { %v442_v21 = vpop.f32.mrf.mxu1 }
 0x1b3   :  { %v402_v22 = vmul.f32 -1.442695, %v204_v20 }
 0x1b5   :  { %465 = vpow2.f32 %v402_v22 }
 0x1c2   :  { %v466_v23 = vpop.eup %465 }
 0x1c3   :  { %v210_v24 = vadd.f32 1.0, %v466_v23 }
 0x1c5   :  { %467 = vrcp.f32 %v210_v24 }
 0x1d2   :  { %v468_v25 = vpop.eup %467 }
 0x1d3   :  { %448 = vmatmul.mubr.msk.f32.vlgmr.msra.gmra.mxu1 %vm222_vm4, %v468_v25 }
 0x1d4   :  { %456 = vmatprep.mubr.msk.f32.mxu1 %vm474_vm0, %v473_v0  ;;  %451 = vmatpush3.msk.msra.mxu1 %vm133_vm1, %v308_v26 }
 0x1d5   :  { %452 = vmatprep.subr.mxu1 %v473_v0 }
 0x1d6   :  { %453 = vmatpush3.msra.mxu1 %v307_v27 }
 0x1d7   :  { %454 = vmatprep.subr.mxu1 %v473_v0 }
 0x1d8   :  { %455 = vmatpush3.msra.mxu1 %v306_v28 }
 0x293   :  { %v296_v30 = vpop.f32.mrf.mxu1 }
 0x294   :  { %v297_v31 = vadd.f32 %v403_v29, %v296_v30 }
 0x295   :  { %v449_v32 = vpop.f32.mrf.mxu1 }
 0x296   :  { %v406_v33 = vmul.f32 -1.442695, %v297_v31 }
 0x298   :  { %469 = vpow2.f32 %v406_v33 }
 0x2a5   :  { %v470_v34 = vpop.eup %469 }
 0x2a6   :  { %v303_v35 = vadd.f32 1.0, %v470_v34 }
 0x2a8   :  { %471 = vrcp.f32 %v303_v35 }
 0x2b5   :  { %v472_v36 = vpop.eup %471 }
 0x2b6   :  { %457 = vmatmul.mubr.msk.f32.vlgmr.msra.gmra.mxu1 %vm129_vm2, %v472_v36 }
 0x376   :  { %v388_v38 = vpop.f32.mrf.mxu1 }
 0x377   :  { %v389_v39 = vadd.f32 %v407_v37, %v388_v38 }
 0x378   :  { %v458_v40 = vpop.f32.mrf.mxu1 }
 0x379   :  { %392 = vst [vmem:[%s608_s9] sm:$0xff] %v389_v39 }

</bundles_post_ra>
